<compile_context>
chip_gen: v6e
topology: v6e:2x2x1
jax: 0.10.0
libtpu: 0.0.40
codegen_flags: <defaults>
</compile_context>

<pallas_src>
import functools

import jax
import jax.numpy as jnp
from jax.experimental import pallas as pl
from jax.experimental.pallas import tpu as pltpu


def _masked_l2_kernel(a_ref, b_ref, m_ref, out_ref, acc_l2_ref, acc_m_ref, *,
                      n_joints: int, seq_len: int, tile_t: int):
    ti = pl.program_id(1)

    @pl.when(ti == 0)
    def _():
        acc_l2_ref[...] = jnp.zeros_like(acc_l2_ref)
        acc_m_ref[...] = jnp.zeros_like(acc_m_ref)

    a = a_ref[...].astype(jnp.float32)          # (tb, J*3, tt)
    b = b_ref[...].astype(jnp.float32)
    d = a - b
    sq = d * d

    # Per-frame mean over joints of the per-joint xyz L2 norm.
    # Unrolled sublane-row sums keep the reduction on the VPU (no cross-lane
    # XLU reduce per frame) and directly yield a lane-dense (tb, tt) result.
    total = jnp.zeros((sq.shape[0], sq.shape[2]), jnp.float32)
    for j in range(n_joints):
        s = sq[:, 3 * j, :] + sq[:, 3 * j + 1, :] + sq[:, 3 * j + 2, :]
        total = total + jnp.sqrt(s)
    l2_mean = total * (1.0 / n_joints)          # (tb, tt)

    # Mask out-of-range lanes of the (possibly partial) tail time tile.
    lane = jax.lax.broadcasted_iota(jnp.int32, l2_mean.shape, 1)
    valid = (ti * tile_t + lane) < seq_len
    m = jnp.where(valid, m_ref[...].astype(jnp.float32), 0.0)
    contrib = jnp.where(valid, l2_mean * m, 0.0)

    acc_l2_ref[...] += jnp.sum(contrib, axis=-1, keepdims=True)   # (tb, 1)
    acc_m_ref[...] += jnp.sum(m, axis=-1, keepdims=True)          # (tb, 1)

    @pl.when(ti == pl.num_programs(1) - 1)
    def _():
        out_ref[...] = acc_l2_ref[...] / acc_m_ref[...]


def masked_l2_loss(kp_pred: jax.Array, kp_gt: jax.Array, mask: jax.Array,
                   *, tile_t: int = 2048) -> jax.Array:
    """Matches GeometricLoss's masked_l2(kp3d_pred, kp3d_gt, padding_mask).

    kp_pred, kp_gt: (B, T, J, 3) keypoints; mask: (B, T). Returns (B,) f32.
    """
    B, T, J, C = kp_pred.shape
    assert C == 3 and kp_gt.shape == kp_pred.shape and mask.shape == (B, T)
    J3 = J * 3

    # Lane-dense layout: time on the lane axis, joint-coords on sublanes.
    a = kp_pred.reshape(B, T, J3).transpose(0, 2, 1)   # (B, J*3, T)
    b = kp_gt.reshape(B, T, J3).transpose(0, 2, 1)

    # Tile sizes: last block dim must be a multiple of 128 or the full dim.
    if T <= 128:
        tt = T
    else:
        tt = max(128, (min(tile_t, T) // 128) * 128)
    # Batch tile: full B (small batches) or a multiple of 8.
    tb = 8 if (B % 8 == 0) else B

    grid = (pl.cdiv(B, tb), pl.cdiv(T, tt))

    itemsize = jnp.dtype(kp_pred.dtype).itemsize
    # 2 keypoint inputs + 1 mask input, double-buffered, plus headroom.
    vmem_bytes = 2 * (2 * tb * J3 * tt * itemsize + tb * tt * itemsize) + (2 << 20)
    vmem_bytes = min(max(vmem_bytes, 4 << 20), 64 << 20)

    kernel = functools.partial(_masked_l2_kernel,
                               n_joints=J, seq_len=T, tile_t=tt)

    out = pl.pallas_call(
        kernel,
        out_shape=jax.ShapeDtypeStruct((B, 1), jnp.float32),
        grid_spec=pltpu.PrefetchScalarGridSpec(
            num_scalar_prefetch=0,
            grid=grid,
            in_specs=[
                pl.BlockSpec((tb, J3, tt), lambda bi, ti: (bi, 0, ti)),
                pl.BlockSpec((tb, J3, tt), lambda bi, ti: (bi, 0, ti)),
                pl.BlockSpec((tb, tt), lambda bi, ti: (bi, ti)),
            ],
            out_specs=pl.BlockSpec((tb, 1), lambda bi, ti: (bi, 0)),
            scratch_shapes=[pltpu.VMEM((tb, 1), jnp.float32),
                            pltpu.VMEM((tb, 1), jnp.float32)],
        ),
        compiler_params=pltpu.CompilerParams(
            dimension_semantics=("parallel", "arbitrary"),
            vmem_limit_bytes=int(vmem_bytes),
        ),
    )(a, b, mask)
    return out[:, 0]


def _masked_l2_ref(a, b, mask):
    # Pure-JAX reference matching masked_l2 / sum_flat from the PyTorch module.
    l2 = jnp.linalg.norm(a - b, axis=-1)                  # (B, T, J)
    if l2.ndim > 2:
        l2 = l2.mean(axis=tuple(range(2, l2.ndim)))       # (B, T)
    m_l2 = jnp.sum(l2 * mask, axis=1)                     # (B,)
    num = jnp.sum(mask, axis=1)                           # (B,)
    return m_l2 / num


if __name__ == "__main__":
    key = jax.random.PRNGKey(0)
    k1, k2 = jax.random.split(key)

    # Small shapes consistent with the module: batch=2, seq=200 frames,
    # J=8 joints (SMPL-X full body would be ~55, same code path).
    B, T, J = 2, 200, 8
    kp_pred = jax.random.normal(k1, (B, T, J, 3), dtype=jnp.float32)
    kp_gt = jax.random.normal(k2, (B, T, J, 3), dtype=jnp.float32)
    lengths = jnp.array([137, 200], dtype=jnp.int32)
    mask = (jnp.arange(T)[None, :] < lengths[:, None]).astype(jnp.float32)

    loss_fn = jax.jit(masked_l2_loss)
    loss = jax.block_until_ready(loss_fn(kp_pred, kp_gt, mask))

    ref = _masked_l2_ref(kp_pred, kp_gt, mask)
    assert loss.shape == (B,)
    assert jnp.allclose(loss, ref, atol=1e-5, rtol=1e-5), (loss, ref)

    print("KERNEL_OK")
</pallas_src>

<mosaic_0001>
module attributes {stable_mosaic.version = 11 : i64} {
  func.func @_masked_l2_kernel(%arg0: i32, %arg1: i32, %arg2: memref<2x24x128xf32, #tpu.memory_space<vmem>>, %arg3: memref<2x24x128xf32, #tpu.memory_space<vmem>>, %arg4: memref<2x128xf32, #tpu.memory_space<vmem>>, %arg5: memref<2x1xf32, #tpu.memory_space<vmem>>, %arg6: memref<2x1xf32, #tpu.memory_space<vmem>>, %arg7: memref<2x1xf32, #tpu.memory_space<vmem>>) attributes {dimension_semantics = [#tpu.dimension_semantics<parallel>, #tpu.dimension_semantics<arbitrary>], iteration_bounds = array<i64: 1, 2>, scalar_prefetch = 0 : i64, scratch_operands = 2 : i64, tpu.core_type = #tpu.core_type<tc>, window_params = [{transform_indices = @transform_0, window_bounds = array<i64: 2, 24, 128>}, {transform_indices = @transform_1, window_bounds = array<i64: 2, 24, 128>}, {transform_indices = @transform_2, window_bounds = array<i64: 2, 128>}, {transform_indices = @transform_3, window_bounds = array<i64: 2, 1>}]} {
    %c0_i32 = arith.constant 0 : i32
    %0 = arith.cmpi eq, %arg1, %c0_i32 : i32
    %1 = arith.extui %0 : i1 to i32
    %c0_i32_0 = arith.constant 0 : i32
    %2 = arith.cmpi ne, %1, %c0_i32_0 : i32
    scf.if %2 {
      %cst_22 = arith.constant 0.000000e+00 : f32
      %115 = vector.broadcast %cst_22 : f32 to vector<2x1xf32>
      %c0_23 = arith.constant 0 : index
      %c0_24 = arith.constant 0 : index
      %116 = vector.load %arg6[%c0_23, %c0_24] : memref<2x1xf32, #tpu.memory_space<vmem>>, vector<2x1xf32>
      tpu.vector_store %arg6[%c0_23, %c0_24], %115 {strides = array<i32>} : memref<2x1xf32, #tpu.memory_space<vmem>>, vector<2x1xf32>,
      %cst_25 = arith.constant 0.000000e+00 : f32
      %117 = vector.broadcast %cst_25 : f32 to vector<2x1xf32>
      %c0_26 = arith.constant 0 : index
      %c0_27 = arith.constant 0 : index
      %118 = vector.load %arg7[%c0_26, %c0_27] : memref<2x1xf32, #tpu.memory_space<vmem>>, vector<2x1xf32>
      tpu.vector_store %arg7[%c0_26, %c0_27], %117 {strides = array<i32>} : memref<2x1xf32, #tpu.memory_space<vmem>>, vector<2x1xf32>,
    } else {
    }
    %c0 = arith.constant 0 : index
    %c0_1 = arith.constant 0 : index
    %c0_2 = arith.constant 0 : index
    %3 = vector.load %arg2[%c0, %c0_1, %c0_2] : memref<2x24x128xf32, #tpu.memory_space<vmem>>, vector<2x24x128xf32>
    %c0_3 = arith.constant 0 : index
    %c0_4 = arith.constant 0 : index
    %c0_5 = arith.constant 0 : index
    %4 = vector.load %arg3[%c0_3, %c0_4, %c0_5] : memref<2x24x128xf32, #tpu.memory_space<vmem>>, vector<2x24x128xf32>
    %5 = arith.subf %3, %4 : vector<2x24x128xf32>
    %6 = arith.mulf %5, %5 : vector<2x24x128xf32>
    %cst = arith.constant 0.000000e+00 : f32
    %7 = vector.broadcast %cst : f32 to vector<2x128xf32>
    %8 = vector.extract_strided_slice %6 {offsets = [0, 0, 0], sizes = [2, 1, 128], strides = [1, 1, 1]} : vector<2x24x128xf32> to vector<2x1x128xf32>
    %9 = vector.shape_cast %8 : vector<2x1x128xf32> to vector<2x128xf32>
    %10 = vector.extract_strided_slice %6 {offsets = [0, 1, 0], sizes = [2, 1, 128], strides = [1, 1, 1]} : vector<2x24x128xf32> to vector<2x1x128xf32>
    %11 = vector.shape_cast %10 : vector<2x1x128xf32> to vector<2x128xf32>
    %12 = arith.addf %9, %11 : vector<2x128xf32>
    %13 = vector.extract_strided_slice %6 {offsets = [0, 2, 0], sizes = [2, 1, 128], strides = [1, 1, 1]} : vector<2x24x128xf32> to vector<2x1x128xf32>
    %14 = vector.shape_cast %13 : vector<2x1x128xf32> to vector<2x128xf32>
    %15 = arith.addf %12, %14 : vector<2x128xf32>
    %16 = math.sqrt %15 : vector<2x128xf32>
    %17 = arith.addf %7, %16 : vector<2x128xf32>
    %18 = vector.extract_strided_slice %6 {offsets = [0, 3, 0], sizes = [2, 1, 128], strides = [1, 1, 1]} : vector<2x24x128xf32> to vector<2x1x128xf32>
    %19 = vector.shape_cast %18 : vector<2x1x128xf32> to vector<2x128xf32>
    %20 = vector.extract_strided_slice %6 {offsets = [0, 4, 0], sizes = [2, 1, 128], strides = [1, 1, 1]} : vector<2x24x128xf32> to vector<2x1x128xf32>
    %21 = vector.shape_cast %20 : vector<2x1x128xf32> to vector<2x128xf32>
    %22 = arith.addf %19, %21 : vector<2x128xf32>
    %23 = vector.extract_strided_slice %6 {offsets = [0, 5, 0], sizes = [2, 1, 128], strides = [1, 1, 1]} : vector<2x24x128xf32> to vector<2x1x128xf32>
    %24 = vector.shape_cast %23 : vector<2x1x128xf32> to vector<2x128xf32>
    %25 = arith.addf %22, %24 : vector<2x128xf32>
    %26 = math.sqrt %25 : vector<2x128xf32>
    %27 = arith.addf %17, %26 : vector<2x128xf32>
    %28 = vector.extract_strided_slice %6 {offsets = [0, 6, 0], sizes = [2, 1, 128], strides = [1, 1, 1]} : vector<2x24x128xf32> to vector<2x1x128xf32>
    %29 = vector.shape_cast %28 : vector<2x1x128xf32> to vector<2x128xf32>
    %30 = vector.extract_strided_slice %6 {offsets = [0, 7, 0], sizes = [2, 1, 128], strides = [1, 1, 1]} : vector<2x24x128xf32> to vector<2x1x128xf32>
    %31 = vector.shape_cast %30 : vector<2x1x128xf32> to vector<2x128xf32>
    %32 = arith.addf %29, %31 : vector<2x128xf32>
    %33 = vector.extract_strided_slice %6 {offsets = [0, 8, 0], sizes = [2, 1, 128], strides = [1, 1, 1]} : vector<2x24x128xf32> to vector<2x1x128xf32>
    %34 = vector.shape_cast %33 : vector<2x1x128xf32> to vector<2x128xf32>
    %35 = arith.addf %32, %34 : vector<2x128xf32>
    %36 = math.sqrt %35 : vector<2x128xf32>
    %37 = arith.addf %27, %36 : vector<2x128xf32>
    %38 = vector.extract_strided_slice %6 {offsets = [0, 9, 0], sizes = [2, 1, 128], strides = [1, 1, 1]} : vector<2x24x128xf32> to vector<2x1x128xf32>
    %39 = vector.shape_cast %38 : vector<2x1x128xf32> to vector<2x128xf32>
    %40 = vector.extract_strided_slice %6 {offsets = [0, 10, 0], sizes = [2, 1, 128], strides = [1, 1, 1]} : vector<2x24x128xf32> to vector<2x1x128xf32>
    %41 = vector.shape_cast %40 : vector<2x1x128xf32> to vector<2x128xf32>
    %42 = arith.addf %39, %41 : vector<2x128xf32>
    %43 = vector.extract_strided_slice %6 {offsets = [0, 11, 0], sizes = [2, 1, 128], strides = [1, 1, 1]} : vector<2x24x128xf32> to vector<2x1x128xf32>
    %44 = vector.shape_cast %43 : vector<2x1x128xf32> to vector<2x128xf32>
    %45 = arith.addf %42, %44 : vector<2x128xf32>
    %46 = math.sqrt %45 : vector<2x128xf32>
    %47 = arith.addf %37, %46 : vector<2x128xf32>
    %48 = vector.extract_strided_slice %6 {offsets = [0, 12, 0], sizes = [2, 1, 128], strides = [1, 1, 1]} : vector<2x24x128xf32> to vector<2x1x128xf32>
    %49 = vector.shape_cast %48 : vector<2x1x128xf32> to vector<2x128xf32>
    %50 = vector.extract_strided_slice %6 {offsets = [0, 13, 0], sizes = [2, 1, 128], strides = [1, 1, 1]} : vector<2x24x128xf32> to vector<2x1x128xf32>
    %51 = vector.shape_cast %50 : vector<2x1x128xf32> to vector<2x128xf32>
    %52 = arith.addf %49, %51 : vector<2x128xf32>
    %53 = vector.extract_strided_slice %6 {offsets = [0, 14, 0], sizes = [2, 1, 128], strides = [1, 1, 1]} : vector<2x24x128xf32> to vector<2x1x128xf32>
    %54 = vector.shape_cast %53 : vector<2x1x128xf32> to vector<2x128xf32>
    %55 = arith.addf %52, %54 : vector<2x128xf32>
    %56 = math.sqrt %55 : vector<2x128xf32>
    %57 = arith.addf %47, %56 : vector<2x128xf32>
    %58 = vector.extract_strided_slice %6 {offsets = [0, 15, 0], sizes = [2, 1, 128], strides = [1, 1, 1]} : vector<2x24x128xf32> to vector<2x1x128xf32>
    %59 = vector.shape_cast %58 : vector<2x1x128xf32> to vector<2x128xf32>
    %60 = vector.extract_strided_slice %6 {offsets = [0, 16, 0], sizes = [2, 1, 128], strides = [1, 1, 1]} : vector<2x24x128xf32> to vector<2x1x128xf32>
    %61 = vector.shape_cast %60 : vector<2x1x128xf32> to vector<2x128xf32>
    %62 = arith.addf %59, %61 : vector<2x128xf32>
    %63 = vector.extract_strided_slice %6 {offsets = [0, 17, 0], sizes = [2, 1, 128], strides = [1, 1, 1]} : vector<2x24x128xf32> to vector<2x1x128xf32>
    %64 = vector.shape_cast %63 : vector<2x1x128xf32> to vector<2x128xf32>
    %65 = arith.addf %62, %64 : vector<2x128xf32>
    %66 = math.sqrt %65 : vector<2x128xf32>
    %67 = arith.addf %57, %66 : vector<2x128xf32>
    %68 = vector.extract_strided_slice %6 {offsets = [0, 18, 0], sizes = [2, 1, 128], strides = [1, 1, 1]} : vector<2x24x128xf32> to vector<2x1x128xf32>
    %69 = vector.shape_cast %68 : vector<2x1x128xf32> to vector<2x128xf32>
    %70 = vector.extract_strided_slice %6 {offsets = [0, 19, 0], sizes = [2, 1, 128], strides = [1, 1, 1]} : vector<2x24x128xf32> to vector<2x1x128xf32>
    %71 = vector.shape_cast %70 : vector<2x1x128xf32> to vector<2x128xf32>
    %72 = arith.addf %69, %71 : vector<2x128xf32>
    %73 = vector.extract_strided_slice %6 {offsets = [0, 20, 0], sizes = [2, 1, 128], strides = [1, 1, 1]} : vector<2x24x128xf32> to vector<2x1x128xf32>
    %74 = vector.shape_cast %73 : vector<2x1x128xf32> to vector<2x128xf32>
    %75 = arith.addf %72, %74 : vector<2x128xf32>
    %76 = math.sqrt %75 : vector<2x128xf32>
    %77 = arith.addf %67, %76 : vector<2x128xf32>
    %78 = vector.extract_strided_slice %6 {offsets = [0, 21, 0], sizes = [2, 1, 128], strides = [1, 1, 1]} : vector<2x24x128xf32> to vector<2x1x128xf32>
    %79 = vector.shape_cast %78 : vector<2x1x128xf32> to vector<2x128xf32>
    %80 = vector.extract_strided_slice %6 {offsets = [0, 22, 0], sizes = [2, 1, 128], strides = [1, 1, 1]} : vector<2x24x128xf32> to vector<2x1x128xf32>
    %81 = vector.shape_cast %80 : vector<2x1x128xf32> to vector<2x128xf32>
    %82 = arith.addf %79, %81 : vector<2x128xf32>
    %83 = vector.extract_strided_slice %6 {offsets = [0, 23, 0], sizes = [2, 1, 128], strides = [1, 1, 1]} : vector<2x24x128xf32> to vector<2x1x128xf32>
    %84 = vector.shape_cast %83 : vector<2x1x128xf32> to vector<2x128xf32>
    %85 = arith.addf %82, %84 : vector<2x128xf32>
    %86 = math.sqrt %85 : vector<2x128xf32>
    %87 = arith.addf %77, %86 : vector<2x128xf32>
    %cst_6 = arith.constant 1.250000e-01 : f32
    %88 = vector.broadcast %cst_6 : f32 to vector<2x128xf32>
    %89 = arith.mulf %87, %88 : vector<2x128xf32>
    %90 = tpu.iota {dimensions = array<i32: 1>} : vector<2x128xi32>
    %c128_i32 = arith.constant 128 : i32
    %91 = arith.muli %arg1, %c128_i32 : i32
    %92 = vector.broadcast %91 : i32 to vector<2x128xi32>
    %93 = arith.addi %92, %90 : vector<2x128xi32>
    %c200_i32 = arith.constant 200 : i32
    %94 = vector.broadcast %c200_i32 : i32 to vector<2x128xi32>
    %95 = arith.cmpi slt, %93, %94 : vector<2x128xi32>
    %c0_7 = arith.constant 0 : index
    %c0_8 = arith.constant 0 : index
    %96 = vector.load %arg4[%c0_7, %c0_8] : memref<2x128xf32, #tpu.memory_space<vmem>>, vector<2x128xf32>
    %cst_9 = arith.constant 0.000000e+00 : f32
    %97 = vector.broadcast %cst_9 : f32 to vector<2x128xf32>
    %98 = arith.select %95, %96, %97 : vector<2x128xi1>, vector<2x128xf32>
    %99 = arith.mulf %89, %98 : vector<2x128xf32>
    %cst_10 = arith.constant 0.000000e+00 : f32
    %100 = vector.broadcast %cst_10 : f32 to vector<2x128xf32>
    %101 = arith.select %95, %99, %100 : vector<2x128xi1>, vector<2x128xf32>
    %c0_11 = arith.constant 0 : index
    %c0_12 = arith.constant 0 : index
    %102 = vector.load %arg6[%c0_11, %c0_12] : memref<2x1xf32, #tpu.memory_space<vmem>>, vector<2x1xf32>
    %cst_13 = arith.constant dense<0.000000e+00> : vector<2xf32>
    %103 = vector.multi_reduction <add>, %101, %cst_13 [1] : vector<2x128xf32> to vector<2xf32>
    %104 = vector.shape_cast %103 : vector<2xf32> to vector<2x1xf32>
    %105 = arith.addf %102, %104 : vector<2x1xf32>
    %c0_14 = arith.constant 0 : index
    %c0_15 = arith.constant 0 : index
    %106 = vector.load %arg6[%c0_14, %c0_15] : memref<2x1xf32, #tpu.memory_space<vmem>>, vector<2x1xf32>
    tpu.vector_store %arg6[%c0_14, %c0_15], %105 {strides = array<i32>} : memref<2x1xf32, #tpu.memory_space<vmem>>, vector<2x1xf32>,
    %c0_16 = arith.constant 0 : index
    %c0_17 = arith.constant 0 : index
    %107 = vector.load %arg7[%c0_16, %c0_17] : memref<2x1xf32, #tpu.memory_space<vmem>>, vector<2x1xf32>
    %cst_18 = arith.constant dense<0.000000e+00> : vector<2xf32>
    %108 = vector.multi_reduction <add>, %98, %cst_18 [1] : vector<2x128xf32> to vector<2xf32>
    %109 = vector.shape_cast %108 : vector<2xf32> to vector<2x1xf32>
    %110 = arith.addf %107, %109 : vector<2x1xf32>
    %c0_19 = arith.constant 0 : index
    %c0_20 = arith.constant 0 : index
    %111 = vector.load %arg7[%c0_19, %c0_20] : memref<2x1xf32, #tpu.memory_space<vmem>>, vector<2x1xf32>
    tpu.vector_store %arg7[%c0_19, %c0_20], %110 {strides = array<i32>} : memref<2x1xf32, #tpu.memory_space<vmem>>, vector<2x1xf32>,
    %c1_i32 = arith.constant 1 : i32
    %112 = arith.cmpi eq, %arg1, %c1_i32 : i32
    %113 = arith.extui %112 : i1 to i32
    %c0_i32_21 = arith.constant 0 : i32
    %114 = arith.cmpi ne, %113, %c0_i32_21 : i32
    scf.if %114 {
      %c0_22 = arith.constant 0 : index
      %c0_23 = arith.constant 0 : index
      %115 = vector.load %arg6[%c0_22, %c0_23] : memref<2x1xf32, #tpu.memory_space<vmem>>, vector<2x1xf32>
      %c0_24 = arith.constant 0 : index
      %c0_25 = arith.constant 0 : index
      %116 = vector.load %arg7[%c0_24, %c0_25] : memref<2x1xf32, #tpu.memory_space<vmem>>, vector<2x1xf32>
      %117 = arith.divf %115, %116 : vector<2x1xf32>
      %c0_26 = arith.constant 0 : index
      %c0_27 = arith.constant 0 : index
      %118 = vector.load %arg5[%c0_26, %c0_27] : memref<2x1xf32, #tpu.memory_space<vmem>>, vector<2x1xf32>
      tpu.vector_store %arg5[%c0_26, %c0_27], %117 {strides = array<i32>} : memref<2x1xf32, #tpu.memory_space<vmem>>, vector<2x1xf32>,
    } else {
    }
    return
  }
  func.func @transform_0(%arg0: i32, %arg1: i32) -> (i32, i32, i32) {
    %c0_i32 = arith.constant 0 : i32
    %c0_i32_0 = arith.constant 0 : i32
    return %arg0, %c0_i32, %arg1 : i32, i32, i32
  }
  func.func @transform_1(%arg0: i32, %arg1: i32) -> (i32, i32, i32) {
    %c0_i32 = arith.constant 0 : i32
    %c0_i32_0 = arith.constant 0 : i32
    return %arg0, %c0_i32, %arg1 : i32, i32, i32
  }
  func.func @transform_2(%arg0: i32, %arg1: i32) -> (i32, i32) {
    %c0_i32 = arith.constant 0 : i32
    return %arg0, %arg1 : i32, i32
  }
  func.func @transform_3(%arg0: i32, %arg1: i32) -> (i32, i32) {
    %c0_i32 = arith.constant 0 : i32
    %c0_i32_0 = arith.constant 0 : i32
    return %arg0, %c0_i32 : i32, i32
  }
}

</mosaic_0001>

<bundles_post_ra>
// kernel: masked_l2_loss.1
= control target key start
LH: loop header
LB: loop body
LE: loop exit
PB: predicated region body
PF: predicated region fallthrough
CT: control target
= control target key end

     0   :  { %s848_s12 = smov 0   ;;  %s850_s13 = smov 0   ;;  %s1063_s0 = inlined_call_operand.vmem [shape: f32[2,24,200], index: 0, kind: input, shape index: {}]   ;;  %s1064_s1 = inlined_call_operand.vmem [shape: f32[2,24,200], index: 1, kind: input, shape index: {}]   ;;  %s1065_s2 = inlined_call_operand.vmem [shape: f32[2,200], index: 2, kind: input, shape index: {}]   ;;  %s1066_s3 = inlined_call_operand.vmem [shape: f32[2,1], index: 3, kind: output, shape index: {}]  }
   0x1   :  { %s852_s14 = smov 0   ;;  %s854_s15 = smov 0  }
   0x2   :  { %s856_s16 = smov 0  }
   0x3 LB: > { %s22_s17 = sadd.s32 1, %s821_s15  ;;  %p41_p1 = scmp.ne.s32.totalorder %s813_s13, %s809_s12  ;;  %s825_s16 = sphi %s856_s16, %s13_s16   ;;  %s821_s15 = sphi %s854_s15, %s1072_s15   ;;  %s817_s14 = sphi %s852_s14, %s1071_s14   ;;  %s813_s13 = sphi %s850_s13, %s1070_s13   ;;  %s809_s12 = sphi %s848_s12, %s1069_s12  }
   0x4   : > { %p23_p0 = scmp.ge.s32.totalorder %s22_s17, 2  ;;  %p42_p2 = scmp.eq.s32.totalorder %s825_s16, 0 }
   0x5   : > { %s34_s20 = sadd.s32 1, %s813_s13  ;;  %p710_p5 = scmp.ge.s32.totalorder %s825_s16, 2 }
   0x6   : > { %s1074_s17 = smov (%p23_p0, %s22_s17), 0  ;;  %p879_p3 = por %p42_p2, %p41_p1 }
   0x7   : > { %s30_s19 = ssub.s32 %s821_s15, %s1074_s17  ;;  %149 = sbr.rel (%p710_p5) target bundleno = 26 (0x1a), region = 16 }
   0x8   : > { %p32_p4 = scmp.eq.s32.totalorder %s30_s19, 0 }
   0xa   : > { %s887_s21 = scalar_select %p32_p4, %s813_s13, %s34_s20  }
   0xc   : > { %152 = sbr.rel (!%p879_p3) target bundleno = 19 (0x13), region = 20  ;;  %s154_s22 = sand.u32 (%p879_p3), 1, %s813_s13  }
   0xd   : > { %s711_s23 = sshll.u32 (%p879_p3), %s821_s15, 3  ;;  %s721_s24 = smul.u32 (%p879_p3), 48, %s154_s22 }
   0xe   : > { %s161_s27 = scalar_lea.vmem (%p879_p3), %s1063_s0, %s711_s23 }
   0xf   : > { %v200_v0 = vld [vmem:[%s161_s27] sm:$0xff] (%p879_p3)  ;;  %v202_v1 = vld [vmem:[%s161_s27 + $0x10] sm:$0xff] (%p879_p3)  ;;  %s156_s28 = scalar_lea.vmem (%p879_p3), [#allocation4], %s721_s24 }
  0x10   : > { %v204_v2 = vld [vmem:[%s161_s27 + $0x20] sm:$0xff] (%p879_p3)  ;;  %v206_v3 = vld [vmem:[%s161_s27 + $0x30] sm:$0xff] (%p879_p3)  ;;  %201 = vst [vmem:[%s156_s28] sm:$0xff] (%p879_p3), %v200_v0  ;;  %203 = vst [vmem:[%s156_s28 + $0x8] sm:$0xff] (%p879_p3), %v202_v1 }
  0x11   : > { %v208_v4 = vld [vmem:[%s161_s27 + $0x40] sm:$0xff]  ;;  %v210_v5 = vld [vmem:[%s161_s27 + $0x50] sm:$0xff]  ;;  %205 = vst [vmem:[%s156_s28 + $0x10] sm:$0xff] %v204_v2  ;;  %207 = vst [vmem:[%s156_s28 + $0x18] sm:$0xff] %v206_v3 }
  0x12   : > { %209 = vst [vmem:[%s156_s28 + $0x20] sm:$0xff] %v208_v4  ;;  %211 = vst [vmem:[%s156_s28 + $0x28] sm:$0xff] %v210_v5 }
  0x13 PF: > { %217 = sbr.rel (!%p879_p3) target bundleno = 26 (0x1a), region = 58  ;;  %s219_s29 = sand.u32 (%p879_p3), 1, %s813_s13  }
  0x14   : > { %s712_s30 = sshll.u32 (%p879_p3), %s821_s15, 3  ;;  %s722_s4 = smul.u32 (%p879_p3), 48, %s219_s29 }
  0x15   : > { %s226_s7 = scalar_lea.vmem (%p879_p3), %s1064_s1, %s712_s30 }
  0x16   : > { %v265_v6 = vld [vmem:[%s226_s7] sm:$0xff] (%p879_p3)  ;;  %v267_v7 = vld [vmem:[%s226_s7 + $0x10] sm:$0xff] (%p879_p3)  ;;  %s221_s8 = scalar_lea.vmem (%p879_p3), [#allocation5], %s722_s4 }
  0x17   : > { %v269_v8 = vld [vmem:[%s226_s7 + $0x20] sm:$0xff] (%p879_p3)  ;;  %v271_v9 = vld [vmem:[%s226_s7 + $0x30] sm:$0xff] (%p879_p3)  ;;  %266 = vst [vmem:[%s221_s8] sm:$0xff] (%p879_p3), %v265_v6  ;;  %268 = vst [vmem:[%s221_s8 + $0x8] sm:$0xff] (%p879_p3), %v267_v7 }
  0x18   : > { %v273_v10 = vld [vmem:[%s226_s7 + $0x40] sm:$0xff]  ;;  %v275_v11 = vld [vmem:[%s226_s7 + $0x50] sm:$0xff]  ;;  %270 = vst [vmem:[%s221_s8 + $0x10] sm:$0xff] %v269_v8  ;;  %272 = vst [vmem:[%s221_s8 + $0x18] sm:$0xff] %v271_v9 }
  0x19   : > { %274 = vst [vmem:[%s221_s8 + $0x20] sm:$0xff] %v273_v10  ;;  %276 = vst [vmem:[%s221_s8 + $0x28] sm:$0xff] %v275_v11 }
  0x1a PF: > { %p713_p6 = scmp.ge.s32.totalorder %s825_s16, 1  ;;  %p292_p7 = scmp.lt.s32.totalorder %s825_s16, 3 }
  0x1c   : > { %p293_p8 = pnand %p713_p6, %p292_p7 }
  0x1d   : > { %s299_s9 = sand.u32 (!%p293_p8), 1, %s809_s12   ;;  %p344_p9 = scmp.lt.s32.totalorder (!%p293_p8), %s817_s14, 1 }
  0x1e   : > { %296 = sbr.rel (%p293_p8) target bundleno = 270 (0x10e), region = 100  ;;  %p715_p10 = scmp.ne.s32.totalorder (!%p293_p8), %s817_s14, 0 }
  0x1f   : > { %s723_s10 = smul.u32 (!%p293_p8), 48, %s299_s9 }
  0x21   : > { %s301_s23 = scalar_lea.vmem (!%p293_p8), [#allocation4], %s723_s10  ;;  %s308_s24 = scalar_lea.vmem (!%p293_p8), [#allocation5], %s723_s10 }
  0x23   : > { %s345_s11 = scalar_select %p344_p9, %s817_s14, 1 }
  0x24   : > { %357 = sbr.rel (%p715_p10) target bundleno = 43 (0x2b), region = 112 }
  0x25   : > { %s714_s18 = sshll.u32 %s345_s11, 1 }
  0x26   : > { %s912_s22 = scalar_lea.vmem %s1065_s2, %s714_s18 }
  0x29   : > { %vm358_vm0 = vcmask 1024   ;;  %v827_v12 = vmov 0.0  }
  0x2a   : > { %359 = vst.msk [vmem:[#allocation2] sm:$0x3] %vm358_vm0, %v827_v12  ;;  %360 = vst.msk [vmem:[#allocation3] sm:$0x3] %vm358_vm0, %v827_v12 }
  0x2b PF: > { %v361_v13 = vld [vmem:[%s301_s23] sm:$0xff]  ;;  %v362_v14 = vld [vmem:[%s301_s23 + $0x8] sm:$0xff]  ;;  %v363_v15 = vld [vmem:[%s301_s23 + $0x10] sm:$0xff]  ;;  %v559_v56 = vlaneseq  ;;  %s716_s12 = sshll.u32 %s817_s14, 7  ;;  %p717_p11 = scmp.ne.s32.totalorder %s817_s14, 1 }
  0x2c   : > { %v364_v16 = vld [vmem:[%s301_s23 + $0x18] sm:$0xff]  ;;  %v365_v17 = vld [vmem:[%s301_s23 + $0x20] sm:$0xff]  ;;  %v366_v18 = vld [vmem:[%s301_s23 + $0x28] sm:$0xff]  ;;  %v562_v63 = vstv %s716_s12 }
  0x2d   : > { %v367_v19 = vld [vmem:[%s308_s24] sm:$0xff]  ;;  %v368_v20 = vld [vmem:[%s308_s24 + $0x8] sm:$0xff]  ;;  %v369_v21 = vld [vmem:[%s308_s24 + $0x10] sm:$0xff]  ;;  %v560_v62 = vand.u32 127, %v559_v56 }
  0x2e   : > { %v370_v22 = vld [vmem:[%s308_s24 + $0x18] sm:$0xff]  ;;  %v371_v23 = vld [vmem:[%s308_s24 + $0x20] sm:$0xff]  ;;  %v372_v24 = vld [vmem:[%s308_s24 + $0x28] sm:$0xff]  ;;  %v373_v25 = vsub.f32 %v361_v13, %v367_v19  ;;  %v374_v26 = vsub.f32 %v362_v14, %v368_v20  ;;  %v375_v27 = vsub.f32 %v363_v15, %v369_v21 }
  0x2f   : > { %v376_v28 = vsub.f32 %v364_v16, %v370_v22  ;;  %v377_v29 = vsub.f32 %v365_v17, %v371_v23  ;;  %v378_v30 = vsub.f32 %v366_v18, %v372_v24  ;;  %v940_v4 = vadd.s32 %v562_v63, %v560_v62 }
  0x30   : > { %v379_v31 = vmul.f32 %v373_v25, %v373_v25  ;;  %v380_v32 = vmul.f32 %v374_v26, %v374_v26  ;;  %v381_v33 = vmul.f32 %v375_v27, %v375_v27 }
  0x31   : > { %v382_v34 = vmul.f32 %v376_v28, %v376_v28  ;;  %v383_v35 = vmul.f32 %v377_v29, %v377_v29  ;;  %v384_v36 = vmul.f32 %v378_v30, %v378_v30 }
  0x32   : > { %v387_v37 = vrot.slane %v379_v31, 1  ;;  %v393_v38 = vrot.slane %v379_v31, 2  ;;  %v425_v39 = vrot.slane %v380_v32, 2  ;;  %v453_v40 = vrot.slane %v380_v32, 1 }
  0x33   : > { %v388_v41 = vrot.slane %v382_v34, 1  ;;  %v394_v42 = vrot.slane %v382_v34, 2  ;;  %v426_v43 = vrot.slane %v383_v35, 2  ;;  %v454_v44 = vrot.slane %v383_v35, 1 }
  0x34   : > { %v391_v45 = vadd.f32 %v387_v37, %v379_v31  ;;  %v457_v46 = vadd.f32 %v453_v40, %v380_v32  ;;  %v491_v51 = vrot.slane %v381_v33, 1  ;;  %v492_v52 = vrot.slane %v384_v36, 1 }
  0x35   : > { %v392_v47 = vadd.f32 %v388_v41, %v382_v34  ;;  %v458_v48 = vadd.f32 %v454_v44, %v383_v35  ;;  %v497_v58 = vrot.slane %v381_v33, 2  ;;  %v498_v61 = vrot.slane %v384_v36, 2 }
  0x36   : > { %v915_v49 = vadd.f32 %v393_v38, %v391_v45  ;;  %v917_v50 = vadd.f32 %v425_v39, %v391_v45  ;;  %v924_v55 = vadd.f32 %v457_v46, %v425_v39  ;;  %v495_v59 = vadd.f32 %v491_v51, %v380_v32 }
  0x37   : > { %v919_v53 = vadd.f32 %v394_v42, %v392_v47  ;;  %v921_v54 = vadd.f32 %v426_v43, %v392_v47  ;;  %v927_v57 = vadd.f32 %v458_v48, %v426_v43  ;;  %v496_v60 = vadd.f32 %v492_v52, %v383_v35 }
  0x38   : > { %765 = vrsqrt.f32 %v915_v49  ;;  %v934_v0 = vadd.f32 %v497_v58, %v495_v59  ;;  %v525_v2 = vadd.f32 %v491_v51, %v381_v33  ;;  %v526_v3 = vadd.f32 %v492_v52, %v384_v36 }
  0x39   : > { %767 = vrsqrt.f32 %v919_v53  ;;  %v936_v1 = vadd.f32 %v498_v61, %v496_v60  ;;  %vm401_vm1 = vcmp.eq.f32.partialorder %v915_v49, inf  ;;  %vm403_vm2 = vcmp.eq.f32.partialorder %v915_v49, 0.0 }
  0x3a   : > { %769 = vrsqrt.f32 %v917_v50  ;;  %v404_v5 = vand.u32 2147483648, %v915_v49  ;;  %vm408_vm3 = vcmp.eq.f32.partialorder %v919_v53, inf  ;;  %vm410_vm4 = vcmp.eq.f32.partialorder %v919_v53, 0.0 }
  0x3b   : > { %771 = vrsqrt.f32 %v921_v54  ;;  %v411_v6 = vand.u32 2147483648, %v919_v53  ;;  %v948_v7 = vadd.f32 %v525_v2, %v497_v58  ;;  %v950_v8 = vadd.f32 %v526_v3, %v498_v61 }
  0x3c   : > { %773 = vrsqrt.f32 %v924_v55  ;;  %vm433_vm5 = vcmp.eq.f32.partialorder %v917_v50, inf  ;;  %vm435_vm6 = vcmp.eq.f32.partialorder %v917_v50, 0.0  ;;  %v436_v9 = vand.u32 2147483648, %v917_v50 }
  0x3d   : > { %775 = vrsqrt.f32 %v927_v57  ;;  %vm440_vm7 = vcmp.eq.f32.partialorder %v921_v54, inf  ;;  %vm442_vm8 = vcmp.eq.f32.partialorder %v921_v54, 0.0  ;;  %v443_v10 = vand.u32 2147483648, %v921_v54 }
  0x3e   : > { %777 = vrsqrt.f32 %v934_v0  ;;  %vm463_vm9 = vcmp.eq.f32.partialorder %v924_v55, inf  ;;  %vm465_vm10 = vcmp.eq.f32.partialorder %v924_v55, 0.0  ;;  %v466_v12 = vand.u32 2147483648, %v924_v55 }
  0x3f   : > { %779 = vrsqrt.f32 %v936_v1  ;;  %vm470_vm11 = vcmp.eq.f32.partialorder %v927_v57, inf  ;;  %vm472_vm12 = vcmp.eq.f32.partialorder %v927_v57, 0.0  ;;  %v473_v15 = vand.u32 2147483648, %v927_v57 }
  0x40   : > { %781 = vrsqrt.f32 %v948_v7  ;;  %vm505_vm13 = vcmp.eq.f32.partialorder %v934_v0, inf  ;;  %vm507_vm14 = vcmp.eq.f32.partialorder %v934_v0, 0.0  ;;  %v508_v18 = vand.u32 2147483648, %v934_v0 }
  0x41   : > { %783 = vrsqrt.f32 %v950_v8  ;;  %vm514_vm0 = vcmp.eq.f32.partialorder %v936_v1, 0.0  ;;  %v515_v22 = vand.u32 2147483648, %v936_v1  ;;  %vm531_vm15 = vcmp.eq.f32.partialorder %v948_v7, inf }
  0x42   : > { %v534_v56 = vand.u32 2147483648, %v948_v7  ;;  %v541_v60 = vand.u32 2147483648, %v950_v8 }
  0x45   : > { %v766_v11 = vpop.eup %765 }
  0x46   : > { %v768_v13 = vpop.eup %767  ;;  %v400_v14 = vmul.f32 %v766_v11, %v915_v49 }
  0x47   : > { %v770_v16 = vpop.eup %769  ;;  %v407_v17 = vmul.f32 %v768_v13, %v919_v53 }
  0x48   : > { %v772_v19 = vpop.eup %771  ;;  %v402_v20 = vsel %vm401_vm1, %v915_v49, %v400_v14  ;;  %v432_v21 = vmul.f32 %v770_v16, %v917_v50  ;;  %vm533_vm1 = vcmp.eq.f32.partialorder %v948_v7, 0.0 }
  0x49   : > { %v774_v23 = vpop.eup %773  ;;  %v405_v24 = vsel %vm403_vm2, %v404_v5, %v402_v20  ;;  %v409_v25 = vsel %vm408_vm3, %v919_v53, %v407_v17  ;;  %v439_v26 = vmul.f32 %v772_v19, %v921_v54  ;;  %vm538_vm2 = vcmp.eq.f32.partialorder %v950_v8, inf }
  0x4a   : > { %v776_v27 = vpop.eup %775  ;;  %v412_v28 = vsel %vm410_vm4, %v411_v6, %v409_v25  ;;  %v417_v29 = vrot.slane %v405_v24, 3  ;;  %v434_v30 = vsel %vm433_vm5, %v917_v50, %v432_v21  ;;  %v462_v31 = vmul.f32 %v774_v23, %v924_v55 }
  0x4b   : > { %v418_v32 = vrot.slane %v412_v28, 3  ;;  %v437_v33 = vsel %vm435_vm6, %v436_v9, %v434_v30  ;;  %v441_v34 = vsel %vm440_vm7, %v921_v54, %v439_v26  ;;  %v469_v35 = vmul.f32 %v776_v27, %v927_v57  ;;  %v778_v40 = vpop.eup %777 }
  0x4c   : > { %v421_v36 = vadd.f32 %v417_v29, %v405_v24  ;;  %v444_v37 = vsel %vm442_vm8, %v443_v10, %v441_v34  ;;  %v447_v38 = vrot.slane %v437_v33, 6  ;;  %v464_v39 = vsel %vm463_vm9, %v924_v55, %v462_v31  ;;  %v780_v45 = vpop.eup %779  ;;  %v580_v34 = vld [vmem:[#allocation2] sm:$0x3] }
  0x4d   : > { %v422_v41 = vadd.f32 %v418_v32, %v412_v28  ;;  %v448_v42 = vrot.slane %v444_v37, 6  ;;  %v467_v43 = vsel %vm465_vm10, %v466_v12, %v464_v39  ;;  %v471_v44 = vsel %vm470_vm11, %v927_v57, %v469_v35  ;;  %v782_v58 = vpop.eup %781  ;;  %v588_v37 = vld [vmem:[#allocation3] sm:$0x3] }
  0x4e   : > { %v451_v46 = vadd.f32 %v447_v38, %v421_v36  ;;  %v474_v47 = vsel %vm472_vm12, %v473_v15, %v471_v44  ;;  %v477_v48 = vrot.slane %v467_v43, 1  ;;  %v483_v49 = vrot.slane %v467_v43, 4  ;;  %v784_v61 = vpop.eup %783 }
  0x4f   : > { %v452_v50 = vadd.f32 %v448_v42, %v422_v41  ;;  %v478_v51 = vrot.slane %v474_v47, 1  ;;  %v484_v52 = vrot.slane %v474_v47, 4  ;;  %v504_v53 = vmul.f32 %v778_v40, %v934_v0 }
  0x50   : > { %v481_v54 = vadd.f32 %v477_v48, %v451_v46  ;;  %v511_v55 = vmul.f32 %v780_v45, %v936_v1  ;;  %vm540_vm3 = vcmp.eq.f32.partialorder %v950_v8, 0.0  ;;  %vm1068_vm4 = vcmp.eq.f32.partialorder %v936_v1, inf }
  0x51   : > { %v482_v59 = vadd.f32 %v478_v51, %v452_v50  ;;  %v506_v57 = vsel %vm505_vm13, %v934_v0, %v504_v53  ;;  %v530_v3 = vmul.f32 %v782_v58, %v948_v7  ;;  %v537_v10 = vmul.f32 %v784_v61, %v950_v8 }
  0x52   : > { %v487_v62 = vadd.f32 %v483_v49, %v481_v54  ;;  %v509_v63 = vsel %vm507_vm14, %v508_v18, %v506_v57  ;;  %v513_v2 = vsel %vm1068_vm4, %v936_v1, %v511_v55  ;;  %vm564_vm5 = vcmp.lt.s32.totalorder %v940_v4, 200  ;;  %v565_v1 = vld [vmem:[%s912_s22] sm:$0x3] }
  0x53   : > { %v488_v5 = vadd.f32 %v484_v52, %v482_v59  ;;  %v516_v6 = vsel %vm514_vm0, %v515_v22, %v513_v2  ;;  %v519_v9 = vrot.slane %v509_v63, 7  ;;  %v532_v12 = vsel %vm531_vm15, %v948_v7, %v530_v3 }
  0x54   : > { %v520_v11 = vrot.slane %v516_v6, 7  ;;  %v535_v13 = vsel %vm533_vm1, %v534_v56, %v532_v12  ;;  %v539_v14 = vsel %vm538_vm2, %v950_v8, %v537_v10  ;;  %v566_v7 = vsel %vm564_vm5, %v565_v1, 0.0 }
  0x55   : > { %v523_v0 = vadd.f32 %v519_v9, %v487_v62  ;;  %v542_v16 = vsel %vm540_vm3, %v541_v60, %v539_v14  ;;  %v545_v17 = vrot.slane %v535_v13, 2  ;;  %v551_v18 = vrot.slane %v535_v13, 5 }
  0x56   : > { %v524_v15 = vadd.f32 %v520_v11, %v488_v5  ;;  %v546_v19 = vrot.slane %v542_v16, 2  ;;  %v552_v20 = vrot.slane %v542_v16, 5  ;;  %v568_v25 = vrot.slane %v566_v7, 1 }
  0x57   : > { %v549_v21 = vadd.f32 %v545_v17, %v523_v0  ;;  %vm576_vm6 = vcmask 1041409   ;;  %vm581_vm7 = vcmask 1041408   ;;  %vm586_vm8 = vcmask 1024  }
  0x58   : > { %v550_v22 = vadd.f32 %v546_v19, %v524_v15  ;;  %v589_v33 = vsel %vm581_vm7, %v566_v7, 0.0 }
  0x59   : > { %v555_v23 = vadd.f32 %v551_v18, %v549_v21 }
  0x5a   : > { %v556_v24 = vadd.f32 %v552_v20, %v550_v22 }
  0x5b   : > { %v557_v26 = vmul.f32 0.125, %v555_v23 }
  0x5c   : > { %v558_v27 = vmul.f32 0.125, %v556_v24 }
  0x5d   : > { %v571_v28 = vmul.f32 %v566_v7, %v557_v26 }
  0x5e   : > { %v572_v29 = vmul.f32 %v568_v25, %v558_v27 }
  0x60   : > { %v575_v30 = vrot.slane %v572_v29, 7 }
  0x62   : > { %v577_v8 = vsel %vm576_vm6, %v575_v30, %v571_v28 }
  0x63   : > { %v579_v31 = vsel %vm564_vm5, %v577_v8, 0.0 }
  0x64   : > { %v582_v32 = vsel %vm581_vm7, %v579_v31, 0.0 }
  0x65   : > { %583 = vadd.xlane.f32.xlu0 %v582_v32 }
  0x69   : > { %590 = vadd.xlane.f32.xlu0 %v589_v33 }
  0xee   : > { %v584_v35 = vpop.xlane.xlu0 %583 }
  0xef   : > { %v585_v36 = vadd.f32 %v584_v35, %v580_v34 }
  0xf1   : > { %587 = vst.msk [vmem:[#allocation2] sm:$0x3] %vm586_vm8, %v585_v36  ;;  %597 = sbr.rel (%p717_p11) target bundleno = 270 (0x10e), region = 116 }
  0xf2   : > { %v591_v38 = vpop.xlane.xlu0 %590 }
  0xf3   : > { %v592_v39 = vadd.f32 %v591_v38, %v588_v37 }
  0xf5   : > { %593 = vst.msk [vmem:[#allocation3] sm:$0x3] %vm586_vm8, %v592_v39 }
  0xf8   : > { %v598_v4 = vld [vmem:[#allocation2] sm:$0x3] }
  0xfc   : > { %v599_v40 = vld [vmem:[#allocation3] sm:$0x3] }
  0xfd   : > { %785 = vrcp.f32 %v599_v40 }
 0x10a   : > { %v786_v41 = vpop.eup %785 }
 0x10b   : > { %v601_v42 = vmul.f32 %v786_v41, %v598_v4 }
 0x10d   : > { %602 = vst.msk [vmem:[%s1066_s3] sm:$0x3] %vm586_vm8, %v601_v42 }
 0x10e PF: > { %s13_s16 = sadd.s32 1, %s825_s16   ;;  %s1069_s12 = smov %s813_s13 }
 0x10f   : > { %p10_p12 = scmp.ge.s32.totalorder %s13_s16, 4   ;;  %s1070_s13 = smov %s887_s21 }
 0x110   : > { %s1071_s14 = smov %s821_s15  ;;  %s1072_s15 = smov %s1074_s17 }
 0x111   :  { %12 = sbr.rel (!%p10_p12) target bundleno = 3 (0x3), region = 162 }

</bundles_post_ra>
